<compile_context>
chip_gen: v7x
topology: tpu7x:2x2x1
jax: 0.10.0
libtpu: 0.0.40
codegen_flags: <defaults>
</compile_context>

<pallas_src>
import functools
import math

import jax
import jax.numpy as jnp
import numpy as np
from jax import lax
from jax.experimental import pallas as pl
from jax.experimental.pallas import tpu as pltpu


# ----------------------------------------------------------------------------
# Fused Pallas kernel: all GCN_LCG iterations in one call (grid = n_iterations)
# ----------------------------------------------------------------------------
def gnn_lcg_kernel(l0_ref, c0_ref, a_ref, w_ref, b_ref,
                   l_out_ref, l_sc, c_sc, *, dim, l_size):
    D = dim
    it = pl.program_id(0)
    n_it = pl.num_programs(0)

    # step 0: load initial embeddings into the VMEM carry
    @pl.when(it == 0)
    def _init():
        l_sc[...] = l0_ref[...]
        c_sc[...] = c0_ref[...]

    l_emb = l_sc[...]                     # (L, D)
    c_emb = c_sc[...]                     # (C, D)
    b = b_ref[...]                        # (8, D): packed bias rows

    def mlp2(x, w1, b1, w2, b2):
        h = jnp.dot(x, w1, preferred_element_type=jnp.float32) + b1
        h = jnp.maximum(h, 0.0)           # relu
        return jnp.dot(h, w2, preferred_element_type=jnp.float32) + b2

    # static, 8-aligned slices of the packed weight slab (loaded once, VMEM-resident)
    l2c_w1 = w_ref[0 * D:1 * D, :]
    l2c_w2 = w_ref[1 * D:2 * D, :]
    c2l_w1 = w_ref[2 * D:3 * D, :]
    c2l_w2 = w_ref[3 * D:4 * D, :]
    l2l_w1 = w_ref[4 * D:5 * D, :]
    l2l_w2 = w_ref[5 * D:6 * D, :]
    wc = w_ref[6 * D:8 * D, :]            # (2D, D)
    wl = w_ref[8 * D:11 * D, :]           # (3D, D)

    # message MLPs (MXU)
    l_msg = mlp2(l_emb, l2c_w1, b[0:1], l2c_w2, b[1:2])       # (L, D)
    c_msg = mlp2(c_emb, c2l_w1, b[2:3], c2l_w2, b[3:4])       # (C, D)

    # in-kernel literal flip: swap adjacent (pos, neg) literal rows.
    # flip[i] = x[i+1] for even i, x[i-1] for odd i  (XLU rolls + parity select).
    row = lax.broadcasted_iota(jnp.int32, (l_size, D), 0)
    l_next = pltpu.roll(l_emb, l_size - 1, 0)   # l_next[i] = l_emb[(i+1) % L]
    l_prev = pltpu.roll(l_emb, 1, 0)            # l_prev[i] = l_emb[(i-1) % L]
    l_flip = jnp.where((row % 2) == 0, l_next, l_prev)
    l2l_msg = mlp2(l_flip, l2l_w1, b[4:5], l2l_w2, b[5:6])    # (L, D)

    # degree-normalized scatter_sum as dense matmuls with incidence matrix A (C, L).
    a = a_ref[...]
    l2c_aggr = jnp.dot(a, l_msg, preferred_element_type=jnp.float32)    # (C, D)
    # A^T @ c_msg without materializing A^T: contract dim 0 of A with dim 0 of c_msg
    c2l_aggr = lax.dot_general(a, c_msg, (((0,), (0,)), ((), ())),
                               preferred_element_type=jnp.float32)      # (L, D)

    # updates: single fat-K matmuls on lane-concatenated activations
    c_new = jnp.dot(jnp.concatenate([c_emb, l2c_aggr], axis=1), wc,
                    preferred_element_type=jnp.float32) + b[6:7]        # (C, D)
    l_new = jnp.dot(jnp.concatenate([l_emb, c2l_aggr, l2l_msg], axis=1), wl,
                    preferred_element_type=jnp.float32) + b[7:8]        # (L, D)

    # carry for next iteration
    l_sc[...] = l_new
    c_sc[...] = c_new

    # write-out only on the last iteration
    @pl.when(it == n_it - 1)
    def _finalize():
        l_out_ref[...] = l_new


# ----------------------------------------------------------------------------
# GNN_LCG forward (GCN core).  Returns l_embs[-1].
# ----------------------------------------------------------------------------
def gnn_lcg_forward(params, l_size, c_size, l_edge_index, c_edge_index, n_iterations):
    dim = params["l_init"].shape[1]

    # init embeddings: 'learned' -> repeat learned row
    l_emb0 = jnp.tile(params["l_init"], (l_size, 1))
    c_emb0 = jnp.tile(params["c_init"], (c_size, 1))

    # degree-normalized dense incidence matrix A[c, l] = sum_edges 1/degree_norm (glue)
    ones = jnp.ones((l_edge_index.shape[0],), jnp.float32)
    l_deg = jnp.zeros((l_size,), jnp.float32).at[l_edge_index].add(ones)
    c_deg = jnp.zeros((c_size,), jnp.float32).at[c_edge_index].add(ones)
    degree_norm = jnp.sqrt(l_deg[l_edge_index]) * jnp.sqrt(c_deg[c_edge_index])  # (E,)
    a_mat = jnp.zeros((c_size, l_size), jnp.float32).at[
        c_edge_index, l_edge_index].add(1.0 / degree_norm)

    # pack parameters: one weight slab (11D, D) + one bias slab (8, D)
    w_slab = jnp.concatenate([
        params["l2c_w1"], params["l2c_w2"],
        params["c2l_w1"], params["c2l_w2"],
        params["l2l_w1"], params["l2l_w2"],
        params["wc"], params["wl"]], axis=0)
    b_slab = jnp.concatenate([
        params["l2c_b1"], params["l2c_b2"],
        params["c2l_b1"], params["c2l_b2"],
        params["l2l_b1"], params["l2l_b2"],
        params["bc"], params["bl"]], axis=0)

    def const2(shape):
        return pl.BlockSpec(shape, lambda it: (0, 0))

    l_final = pl.pallas_call(
        functools.partial(gnn_lcg_kernel, dim=dim, l_size=l_size),
        out_shape=jax.ShapeDtypeStruct((l_size, dim), jnp.float32),
        grid_spec=pltpu.PrefetchScalarGridSpec(
            num_scalar_prefetch=0,
            grid=(n_iterations,),
            in_specs=[
                const2((l_size, dim)),        # l_emb init  (resident)
                const2((c_size, dim)),        # c_emb init  (resident)
                const2((c_size, l_size)),     # A           (resident)
                const2(w_slab.shape),         # packed weights
                const2(b_slab.shape),         # packed biases
            ],
            out_specs=const2((l_size, dim)),
            scratch_shapes=[
                pltpu.VMEM((l_size, dim), jnp.float32),   # l_emb carry
                pltpu.VMEM((c_size, dim), jnp.float32),   # c_emb carry
            ],
        ),
        compiler_params=pltpu.CompilerParams(
            dimension_semantics=("arbitrary",),
            vmem_limit_bytes=32 * 1024 * 1024,
        ),
    )(l_emb0, c_emb0, a_mat, w_slab, b_slab)
    return l_final


# ----------------------------------------------------------------------------
# Pure-JAX reference (mirrors the PyTorch gather/scatter semantics exactly)
# ----------------------------------------------------------------------------
def ref_forward(params, l_size, c_size, l_edge_index, c_edge_index, n_iterations):
    dim = params["l_init"].shape[1]
    l_emb = jnp.tile(params["l_init"], (l_size, 1))
    c_emb = jnp.tile(params["c_init"], (c_size, 1))

    def mlp2(x, w1, b1, w2, b2):
        return jnp.maximum(x @ w1 + b1, 0.0) @ w2 + b2

    ones = jnp.ones((l_edge_index.shape[0],), jnp.float32)
    l_deg = jnp.zeros((l_size,), jnp.float32).at[l_edge_index].add(ones)
    c_deg = jnp.zeros((c_size,), jnp.float32).at[c_edge_index].add(ones)
    degree_norm = (jnp.sqrt(l_deg[l_edge_index]) * jnp.sqrt(c_deg[c_edge_index]))[:, None]

    for _ in range(n_iterations):
        l_msg_feat = mlp2(l_emb, params["l2c_w1"], params["l2c_b1"],
                          params["l2c_w2"], params["l2c_b2"])
        l2c_msg = l_msg_feat[l_edge_index]
        c_msg_feat = mlp2(c_emb, params["c2l_w1"], params["c2l_b1"],
                          params["c2l_w2"], params["c2l_b2"])
        c2l_msg = c_msg_feat[c_edge_index]
        l_flip = l_emb.reshape(l_size // 2, 2, dim)[:, ::-1, :].reshape(l_size, dim)
        l2l_msg = mlp2(l_flip, params["l2l_w1"], params["l2l_b1"],
                       params["l2l_w2"], params["l2l_b2"])
        l2c_aggr = jnp.zeros((c_size, dim), jnp.float32).at[c_edge_index].add(
            l2c_msg / degree_norm)
        c_emb = jnp.concatenate([c_emb, l2c_aggr], axis=1) @ params["wc"] + params["bc"]
        c2l_aggr = jnp.zeros((l_size, dim), jnp.float32).at[l_edge_index].add(
            c2l_msg / degree_norm)
        l_emb = (jnp.concatenate([l_emb, c2l_aggr, l2l_msg], axis=1) @ params["wl"]
                 + params["bl"])
    return l_emb


# ----------------------------------------------------------------------------
# Deterministic parameter init
# ----------------------------------------------------------------------------
def init_params(key, dim):
    ks = jax.random.split(key, 20)
    s = math.sqrt(2.0 / dim)

    def w(k, shape, scale):
        return (jax.random.normal(k, shape, jnp.float32) * scale).astype(jnp.float32)

    return {
        "l_init": w(ks[0], (1, dim), s),
        "c_init": w(ks[1], (1, dim), s),
        "l2c_w1": w(ks[2], (dim, dim), s), "l2c_b1": jnp.zeros((1, dim), jnp.float32),
        "l2c_w2": w(ks[3], (dim, dim), s), "l2c_b2": jnp.zeros((1, dim), jnp.float32),
        "c2l_w1": w(ks[4], (dim, dim), s), "c2l_b1": jnp.zeros((1, dim), jnp.float32),
        "c2l_w2": w(ks[5], (dim, dim), s), "c2l_b2": jnp.zeros((1, dim), jnp.float32),
        "l2l_w1": w(ks[6], (dim, dim), s), "l2l_b1": jnp.zeros((1, dim), jnp.float32),
        "l2l_w2": w(ks[7], (dim, dim), s), "l2l_b2": jnp.zeros((1, dim), jnp.float32),
        "wc": w(ks[8], (2 * dim, dim), math.sqrt(2.0 / (2 * dim))),
        "bc": jnp.zeros((1, dim), jnp.float32),
        "wl": w(ks[9], (3 * dim, dim), math.sqrt(2.0 / (3 * dim))),
        "bl": jnp.zeros((1, dim), jnp.float32),
    }


if __name__ == "__main__":
    DIM = 32
    N_ITER = 2
    N_VARS = 8
    L_SIZE = 2 * N_VARS      # 16 literals
    C_SIZE = 8               # 8 clauses, 3 literals each

    key = jax.random.PRNGKey(0)
    params = init_params(key, DIM)

    # deterministic synthetic LCG edge lists (each clause touches 3 literals)
    l_edge, c_edge = [], []
    for j in range(C_SIZE):
        for off in (0, 5, 9):
            l_edge.append((3 * j + off) % L_SIZE)
            c_edge.append(j)
    l_edge_index = jnp.asarray(l_edge, jnp.int32)
    c_edge_index = jnp.asarray(c_edge, jnp.int32)

    out = gnn_lcg_forward(params, L_SIZE, C_SIZE, l_edge_index, c_edge_index, N_ITER)
    out = jax.block_until_ready(out)

    ref = ref_forward(params, L_SIZE, C_SIZE, l_edge_index, c_edge_index, N_ITER)
    np.testing.assert_allclose(np.asarray(out), np.asarray(ref), rtol=1e-4, atol=1e-4)

    # TODO(synk): l_readout MLP exists in GNN_LCG.__init__ but is unused in forward
    # (forward returns l_embs[-1]), so it is intentionally not implemented.
    print("KERNEL_OK")
</pallas_src>

<mosaic_0001>
module attributes {stable_mosaic.version = 11 : i64} {
  func.func @gnn_lcg_kernel(%arg0: i32, %arg1: memref<16x32xf32, #tpu.memory_space<vmem>>, %arg2: memref<8x32xf32, #tpu.memory_space<vmem>>, %arg3: memref<8x16xf32, #tpu.memory_space<vmem>>, %arg4: memref<352x32xf32, #tpu.memory_space<vmem>>, %arg5: memref<8x32xf32, #tpu.memory_space<vmem>>, %arg6: memref<16x32xf32, #tpu.memory_space<vmem>>, %arg7: memref<16x32xf32, #tpu.memory_space<vmem>>, %arg8: memref<8x32xf32, #tpu.memory_space<vmem>>) attributes {dimension_semantics = [#tpu.dimension_semantics<arbitrary>], iteration_bounds = array<i64: 2>, scalar_prefetch = 0 : i64, scratch_operands = 2 : i64, tpu.core_type = #tpu.core_type<tc>, window_params = [{pipeline_mode = #tpu.pipeline_mode<synchronous>, transform_indices = @transform_0, window_bounds = array<i64: 16, 32>}, {pipeline_mode = #tpu.pipeline_mode<synchronous>, transform_indices = @transform_1, window_bounds = array<i64: 8, 32>}, {pipeline_mode = #tpu.pipeline_mode<synchronous>, transform_indices = @transform_2, window_bounds = array<i64: 8, 16>}, {pipeline_mode = #tpu.pipeline_mode<synchronous>, transform_indices = @transform_3, window_bounds = array<i64: 352, 32>}, {pipeline_mode = #tpu.pipeline_mode<synchronous>, transform_indices = @transform_4, window_bounds = array<i64: 8, 32>}, {pipeline_mode = #tpu.pipeline_mode<synchronous>, transform_indices = @transform_5, window_bounds = array<i64: 16, 32>}]} {
    %c0_i32 = arith.constant 0 : i32
    %0 = arith.cmpi eq, %arg0, %c0_i32 : i32
    %1 = arith.extui %0 : i1 to i32
    %c0_i32_0 = arith.constant 0 : i32
    %2 = arith.cmpi ne, %1, %c0_i32_0 : i32
    scf.if %2 {
      %c0_41 = arith.constant 0 : index
      %c0_42 = arith.constant 0 : index
      %84 = vector.load %arg1[%c0_41, %c0_42] : memref<16x32xf32, #tpu.memory_space<vmem>>, vector<16x32xf32>
      %c0_43 = arith.constant 0 : index
      %c0_44 = arith.constant 0 : index
      %85 = vector.load %arg7[%c0_43, %c0_44] : memref<16x32xf32, #tpu.memory_space<vmem>>, vector<16x32xf32>
      tpu.vector_store %arg7[%c0_43, %c0_44], %84 {strides = array<i32>} : memref<16x32xf32, #tpu.memory_space<vmem>>, vector<16x32xf32>,
      %c0_45 = arith.constant 0 : index
      %c0_46 = arith.constant 0 : index
      %86 = vector.load %arg2[%c0_45, %c0_46] : memref<8x32xf32, #tpu.memory_space<vmem>>, vector<8x32xf32>
      %c0_47 = arith.constant 0 : index
      %c0_48 = arith.constant 0 : index
      %87 = vector.load %arg8[%c0_47, %c0_48] : memref<8x32xf32, #tpu.memory_space<vmem>>, vector<8x32xf32>
      tpu.vector_store %arg8[%c0_47, %c0_48], %86 {strides = array<i32>} : memref<8x32xf32, #tpu.memory_space<vmem>>, vector<8x32xf32>,
    } else {
    }
    %c0 = arith.constant 0 : index
    %c0_1 = arith.constant 0 : index
    %3 = vector.load %arg7[%c0, %c0_1] : memref<16x32xf32, #tpu.memory_space<vmem>>, vector<16x32xf32>
    %c0_2 = arith.constant 0 : index
    %c0_3 = arith.constant 0 : index
    %4 = vector.load %arg8[%c0_2, %c0_3] : memref<8x32xf32, #tpu.memory_space<vmem>>, vector<8x32xf32>
    %c0_4 = arith.constant 0 : index
    %c0_5 = arith.constant 0 : index
    %5 = vector.load %arg5[%c0_4, %c0_5] : memref<8x32xf32, #tpu.memory_space<vmem>>, vector<8x32xf32>
    %c0_6 = arith.constant 0 : index
    %c0_7 = arith.constant 0 : index
    %6 = vector.load %arg4[%c0_6, %c0_7] : memref<352x32xf32, #tpu.memory_space<vmem>>, vector<32x32xf32>
    %c32 = arith.constant 32 : index
    %c0_8 = arith.constant 0 : index
    %7 = vector.load %arg4[%c32, %c0_8] : memref<352x32xf32, #tpu.memory_space<vmem>>, vector<32x32xf32>
    %c64 = arith.constant 64 : index
    %c0_9 = arith.constant 0 : index
    %8 = vector.load %arg4[%c64, %c0_9] : memref<352x32xf32, #tpu.memory_space<vmem>>, vector<32x32xf32>
    %c96 = arith.constant 96 : index
    %c0_10 = arith.constant 0 : index
    %9 = vector.load %arg4[%c96, %c0_10] : memref<352x32xf32, #tpu.memory_space<vmem>>, vector<32x32xf32>
    %c128 = arith.constant 128 : index
    %c0_11 = arith.constant 0 : index
    %10 = vector.load %arg4[%c128, %c0_11] : memref<352x32xf32, #tpu.memory_space<vmem>>, vector<32x32xf32>
    %c160 = arith.constant 160 : index
    %c0_12 = arith.constant 0 : index
    %11 = vector.load %arg4[%c160, %c0_12] : memref<352x32xf32, #tpu.memory_space<vmem>>, vector<32x32xf32>
    %c192 = arith.constant 192 : index
    %c0_13 = arith.constant 0 : index
    %12 = vector.load %arg4[%c192, %c0_13] : memref<352x32xf32, #tpu.memory_space<vmem>>, vector<64x32xf32>
    %c256 = arith.constant 256 : index
    %c0_14 = arith.constant 0 : index
    %13 = vector.load %arg4[%c256, %c0_14] : memref<352x32xf32, #tpu.memory_space<vmem>>, vector<96x32xf32>
    %14 = vector.extract_strided_slice %5 {offsets = [0, 0], sizes = [1, 32], strides = [1, 1]} : vector<8x32xf32> to vector<1x32xf32>
    %15 = vector.extract_strided_slice %5 {offsets = [1, 0], sizes = [1, 32], strides = [1, 1]} : vector<8x32xf32> to vector<1x32xf32>
    %cst = arith.constant dense<0.000000e+00> : vector<16x32xf32>
    %16 = tpu.matmul %3, %6, %cst {dimension_numbers = #tpu.dot_dimension_numbers<[1], [0], [0], [1], [0, 0, 1, 1], [], []>} : vector<16x32xf32>, vector<32x32xf32>, vector<16x32xf32> -> vector<16x32xf32>
    %17 = vector.broadcast %14 : vector<1x32xf32> to vector<16x32xf32>
    %18 = arith.addf %16, %17 : vector<16x32xf32>
    %cst_15 = arith.constant 0.000000e+00 : f32
    %19 = vector.broadcast %cst_15 : f32 to vector<16x32xf32>
    %20 = arith.maximumf %18, %19 : vector<16x32xf32>
    %cst_16 = arith.constant dense<0.000000e+00> : vector<16x32xf32>
    %21 = tpu.matmul %20, %7, %cst_16 {dimension_numbers = #tpu.dot_dimension_numbers<[1], [0], [0], [1], [0, 0, 1, 1], [], []>} : vector<16x32xf32>, vector<32x32xf32>, vector<16x32xf32> -> vector<16x32xf32>
    %22 = vector.broadcast %15 : vector<1x32xf32> to vector<16x32xf32>
    %23 = arith.addf %21, %22 : vector<16x32xf32>
    %24 = vector.extract_strided_slice %5 {offsets = [2, 0], sizes = [1, 32], strides = [1, 1]} : vector<8x32xf32> to vector<1x32xf32>
    %25 = vector.extract_strided_slice %5 {offsets = [3, 0], sizes = [1, 32], strides = [1, 1]} : vector<8x32xf32> to vector<1x32xf32>
    %cst_17 = arith.constant dense<0.000000e+00> : vector<8x32xf32>
    %26 = tpu.matmul %4, %8, %cst_17 {dimension_numbers = #tpu.dot_dimension_numbers<[1], [0], [0], [1], [0, 0, 1, 1], [], []>} : vector<8x32xf32>, vector<32x32xf32>, vector<8x32xf32> -> vector<8x32xf32>
    %27 = vector.broadcast %24 : vector<1x32xf32> to vector<8x32xf32>
    %28 = arith.addf %26, %27 : vector<8x32xf32>
    %cst_18 = arith.constant 0.000000e+00 : f32
    %29 = vector.broadcast %cst_18 : f32 to vector<8x32xf32>
    %30 = arith.maximumf %28, %29 : vector<8x32xf32>
    %cst_19 = arith.constant dense<0.000000e+00> : vector<8x32xf32>
    %31 = tpu.matmul %30, %9, %cst_19 {dimension_numbers = #tpu.dot_dimension_numbers<[1], [0], [0], [1], [0, 0, 1, 1], [], []>} : vector<8x32xf32>, vector<32x32xf32>, vector<8x32xf32> -> vector<8x32xf32>
    %32 = vector.broadcast %25 : vector<1x32xf32> to vector<8x32xf32>
    %33 = arith.addf %31, %32 : vector<8x32xf32>
    %34 = tpu.iota {dimensions = array<i32: 0>} : vector<16x32xi32>
    %c15_i32 = arith.constant 15 : i32
    %35 = tpu.dynamic_rotate %3 by %c15_i32 dim 0 : vector<16x32xf32>, i32 -> vector<16x32xf32>
    %c1_i32 = arith.constant 1 : i32
    %36 = tpu.dynamic_rotate %3 by %c1_i32 dim 0 : vector<16x32xf32>, i32 -> vector<16x32xf32>
    %c2_i32 = arith.constant 2 : i32
    %c0_i32_20 = arith.constant 0 : i32
    %37 = arith.cmpi eq, %c2_i32, %c0_i32_20 : i32
    %c1_i32_21 = arith.constant 1 : i32
    %38 = arith.select %37, %c1_i32_21, %c2_i32 : i32
    %39 = vector.broadcast %38 : i32 to vector<16x32xi32>
    %40 = arith.remsi %34, %39 : vector<16x32xi32>
    %c0_i32_22 = arith.constant 0 : i32
    %41 = vector.broadcast %c0_i32_22 : i32 to vector<16x32xi32>
    %42 = arith.cmpi ne, %40, %41 : vector<16x32xi32>
    %c0_i32_23 = arith.constant 0 : i32
    %43 = vector.broadcast %c0_i32_23 : i32 to vector<16x32xi32>
    %44 = arith.cmpi slt, %40, %43 : vector<16x32xi32>
    %c0_i32_24 = arith.constant 0 : i32
    %45 = arith.cmpi slt, %38, %c0_i32_24 : i32
    %46 = vector.broadcast %45 : i1 to vector<16x32xi1>
    %47 = vector.broadcast %46 : vector<16x32xi1> to vector<16x32xi1>
    %48 = arith.xori %44, %47 : vector<16x32xi1>
    %49 = arith.andi %48, %42 : vector<16x32xi1>
    %50 = vector.broadcast %38 : i32 to vector<16x32xi32>
    %51 = arith.addi %40, %50 : vector<16x32xi32>
    %52 = arith.select %49, %51, %40 : vector<16x32xi1>, vector<16x32xi32>
    %c0_i32_25 = arith.constant 0 : i32
    %53 = vector.broadcast %c0_i32_25 : i32 to vector<16x32xi32>
    %54 = arith.cmpi eq, %52, %53 : vector<16x32xi32>
    %55 = arith.select %54, %35, %36 : vector<16x32xi1>, vector<16x32xf32>
    %56 = vector.extract_strided_slice %5 {offsets = [4, 0], sizes = [1, 32], strides = [1, 1]} : vector<8x32xf32> to vector<1x32xf32>
    %57 = vector.extract_strided_slice %5 {offsets = [5, 0], sizes = [1, 32], strides = [1, 1]} : vector<8x32xf32> to vector<1x32xf32>
    %cst_26 = arith.constant dense<0.000000e+00> : vector<16x32xf32>
    %58 = tpu.matmul %55, %10, %cst_26 {dimension_numbers = #tpu.dot_dimension_numbers<[1], [0], [0], [1], [0, 0, 1, 1], [], []>} : vector<16x32xf32>, vector<32x32xf32>, vector<16x32xf32> -> vector<16x32xf32>
    %59 = vector.broadcast %56 : vector<1x32xf32> to vector<16x32xf32>
    %60 = arith.addf %58, %59 : vector<16x32xf32>
    %cst_27 = arith.constant 0.000000e+00 : f32
    %61 = vector.broadcast %cst_27 : f32 to vector<16x32xf32>
    %62 = arith.maximumf %60, %61 : vector<16x32xf32>
    %cst_28 = arith.constant dense<0.000000e+00> : vector<16x32xf32>
    %63 = tpu.matmul %62, %11, %cst_28 {dimension_numbers = #tpu.dot_dimension_numbers<[1], [0], [0], [1], [0, 0, 1, 1], [], []>} : vector<16x32xf32>, vector<32x32xf32>, vector<16x32xf32> -> vector<16x32xf32>
    %64 = vector.broadcast %57 : vector<1x32xf32> to vector<16x32xf32>
    %65 = arith.addf %63, %64 : vector<16x32xf32>
    %c0_29 = arith.constant 0 : index
    %c0_30 = arith.constant 0 : index
    %66 = vector.load %arg3[%c0_29, %c0_30] : memref<8x16xf32, #tpu.memory_space<vmem>>, vector<8x16xf32>
    %cst_31 = arith.constant dense<0.000000e+00> : vector<8x32xf32>
    %67 = tpu.matmul %66, %23, %cst_31 {dimension_numbers = #tpu.dot_dimension_numbers<[1], [0], [0], [1], [0, 0, 1, 1], [], []>} : vector<8x16xf32>, vector<16x32xf32>, vector<8x32xf32> -> vector<8x32xf32>
    %cst_32 = arith.constant dense<0.000000e+00> : vector<16x32xf32>
    %68 = tpu.matmul %66, %33, %cst_32 {dimension_numbers = #tpu.dot_dimension_numbers<[0], [0], [1], [1], [0, 1, 1, 1], [], []>} : vector<8x16xf32>, vector<8x32xf32>, vector<16x32xf32> -> vector<16x32xf32>
    %69 = tpu.concatenate %4, %67 in 1 : vector<8x32xf32>, vector<8x32xf32> -> vector<8x64xf32>
    %cst_33 = arith.constant dense<0.000000e+00> : vector<8x32xf32>
    %70 = tpu.matmul %69, %12, %cst_33 {dimension_numbers = #tpu.dot_dimension_numbers<[1], [0], [0], [1], [0, 0, 1, 1], [], []>} : vector<8x64xf32>, vector<64x32xf32>, vector<8x32xf32> -> vector<8x32xf32>
    %71 = vector.extract_strided_slice %5 {offsets = [6, 0], sizes = [1, 32], strides = [1, 1]} : vector<8x32xf32> to vector<1x32xf32>
    %72 = vector.broadcast %71 : vector<1x32xf32> to vector<8x32xf32>
    %73 = arith.addf %70, %72 : vector<8x32xf32>
    %74 = tpu.concatenate %3, %68, %65 in 1 : vector<16x32xf32>, vector<16x32xf32>, vector<16x32xf32> -> vector<16x96xf32>
    %cst_34 = arith.constant dense<0.000000e+00> : vector<16x32xf32>
    %75 = tpu.matmul %74, %13, %cst_34 {dimension_numbers = #tpu.dot_dimension_numbers<[1], [0], [0], [1], [0, 0, 1, 1], [], []>} : vector<16x96xf32>, vector<96x32xf32>, vector<16x32xf32> -> vector<16x32xf32>
    %76 = vector.extract_strided_slice %5 {offsets = [7, 0], sizes = [1, 32], strides = [1, 1]} : vector<8x32xf32> to vector<1x32xf32>
    %77 = vector.broadcast %76 : vector<1x32xf32> to vector<16x32xf32>
    %78 = arith.addf %75, %77 : vector<16x32xf32>
    %c0_35 = arith.constant 0 : index
    %c0_36 = arith.constant 0 : index
    %79 = vector.load %arg7[%c0_35, %c0_36] : memref<16x32xf32, #tpu.memory_space<vmem>>, vector<16x32xf32>
    tpu.vector_store %arg7[%c0_35, %c0_36], %78 {strides = array<i32>} : memref<16x32xf32, #tpu.memory_space<vmem>>, vector<16x32xf32>,
    %c0_37 = arith.constant 0 : index
    %c0_38 = arith.constant 0 : index
    %80 = vector.load %arg8[%c0_37, %c0_38] : memref<8x32xf32, #tpu.memory_space<vmem>>, vector<8x32xf32>
    tpu.vector_store %arg8[%c0_37, %c0_38], %73 {strides = array<i32>} : memref<8x32xf32, #tpu.memory_space<vmem>>, vector<8x32xf32>,
    %c1_i32_39 = arith.constant 1 : i32
    %81 = arith.cmpi eq, %arg0, %c1_i32_39 : i32
    %82 = arith.extui %81 : i1 to i32
    %c0_i32_40 = arith.constant 0 : i32
    %83 = arith.cmpi ne, %82, %c0_i32_40 : i32
    scf.if %83 {
      %c0_41 = arith.constant 0 : index
      %c0_42 = arith.constant 0 : index
      %84 = vector.load %arg6[%c0_41, %c0_42] : memref<16x32xf32, #tpu.memory_space<vmem>>, vector<16x32xf32>
      tpu.vector_store %arg6[%c0_41, %c0_42], %78 {strides = array<i32>} : memref<16x32xf32, #tpu.memory_space<vmem>>, vector<16x32xf32>,
    } else {
    }
    return
  }
  func.func @transform_0(%arg0: i32) -> (i32, i32) {
    %c0_i32 = arith.constant 0 : i32
    %c0_i32_0 = arith.constant 0 : i32
    %c0_i32_1 = arith.constant 0 : i32
    return %c0_i32, %c0_i32_0 : i32, i32
  }
  func.func @transform_1(%arg0: i32) -> (i32, i32) {
    %c0_i32 = arith.constant 0 : i32
    %c0_i32_0 = arith.constant 0 : i32
    %c0_i32_1 = arith.constant 0 : i32
    return %c0_i32, %c0_i32_0 : i32, i32
  }
  func.func @transform_2(%arg0: i32) -> (i32, i32) {
    %c0_i32 = arith.constant 0 : i32
    %c0_i32_0 = arith.constant 0 : i32
    %c0_i32_1 = arith.constant 0 : i32
    return %c0_i32, %c0_i32_0 : i32, i32
  }
  func.func @transform_3(%arg0: i32) -> (i32, i32) {
    %c0_i32 = arith.constant 0 : i32
    %c0_i32_0 = arith.constant 0 : i32
    %c0_i32_1 = arith.constant 0 : i32
    return %c0_i32, %c0_i32_0 : i32, i32
  }
  func.func @transform_4(%arg0: i32) -> (i32, i32) {
    %c0_i32 = arith.constant 0 : i32
    %c0_i32_0 = arith.constant 0 : i32
    %c0_i32_1 = arith.constant 0 : i32
    return %c0_i32, %c0_i32_0 : i32, i32
  }
  func.func @transform_5(%arg0: i32) -> (i32, i32) {
    %c0_i32 = arith.constant 0 : i32
    %c0_i32_0 = arith.constant 0 : i32
    %c0_i32_1 = arith.constant 0 : i32
    return %c0_i32, %c0_i32_0 : i32, i32
  }
}

</mosaic_0001>

<bundles_post_ra>
// kernel: tpu_custom_call.1
= control target key start
LH: loop header
LB: loop body
LE: loop exit
PB: predicated region body
PF: predicated region fallthrough
CT: control target
= control target key end

     0   :  { %10 = vsyncpa [#allocation5], 0  ;;  %s1607_s18 = smov 0   ;;  %s1874_s0 = inlined_call_operand.vmem [shape: f32[16,32], index: 0, kind: input, shape index: {}]   ;;  %s1875_s1 = inlined_call_operand.vmem [shape: f32[8,32], index: 1, kind: input, shape index: {}]   ;;  %s1876_s2 = inlined_call_operand.vmem [shape: f32[8,16], index: 2, kind: input, shape index: {}]   ;;  %s1877_s3 = inlined_call_operand.vmem [shape: f32[352,32], index: 3, kind: input, shape index: {}]   ;;  %s1878_s4 = inlined_call_operand.vmem [shape: f32[8,32], index: 4, kind: input, shape index: {}]   ;;  %s1879_s5 = inlined_call_operand.hbm [shape: f32[16,32], index: 5, kind: output, shape index: {}]  }
   0x1 LB: > { %s1613_s19 = sadd.s32 4294967295, %s1567_s18   ;;  %p1216_p0 = scmp.ge.s32.totalorder %s1567_s18, 1  ;;  %s1567_s18 = sphi %s1607_s18, %s16_s18  }
   0x2   : > { %p173_p1 = scmp.lt.s32.totalorder %s1567_s18, 3 }
   0x4   : > { %p174_p2 = pnand %p1216_p0, %p173_p1 }
   0x5   : > { %p1217_p3 = scmp.ne.s32.totalorder (!%p174_p2), %s1613_s19, 0 }
   0x6   : > { %177 = sbr.rel (%p174_p2) target bundleno = 1054 (0x41e), region = 40 }
   0xd   : > { %194 = sbr.rel (%p1217_p3) target bundleno = 20 (0x14), region = 44  ;;  %v195_v0 = vld [vmem:[%s1874_s0] sm:$0xff] (!%p1217_p3)  ;;  %vm197_vm0 = vcmask (!%p1217_p3), 261120   ;;  %v196_v1 = vld [vmem:[%s1874_s0 + $0x8] sm:$0xff] (!%p1217_p3) }
   0xe   : > { %v200_v2 = vld [vmem:[%s1875_s1] sm:$0xff] (!%p1217_p3)  ;;  %198 = vst.msk [vmem:[#allocation2] sm:$0xff] (!%p1217_p3), %vm197_vm0, %v195_v0  ;;  %199 = vst.msk [vmem:[#allocation2 + $0x8] sm:$0xff] (!%p1217_p3), %vm197_vm0, %v196_v1 }
   0xf   : > { %201 = vst.msk [vmem:[#allocation3] sm:$0xff] (!%p1217_p3), %vm197_vm0, %v200_v2 }
  0x14 PF: > { %v206_v3 = vld [vmem:[%s1877_s3] sm:$0xff]  ;;  %v207_v4 = vld [vmem:[%s1877_s3 + $0x8] sm:$0xff]  ;;  %v208_v5 = vld [vmem:[%s1877_s3 + $0x10] sm:$0xff]  ;;  %vm254_vm1 = vcmask 261120   ;;  %v1569_v17 = vmov 0.0|0.0   ;;  %vm1570_vm2 = vmmov 0   ;;  %v250_v25 = vlaneseq }
  0x15   : > { %v1426_v6 = vpack.c.bf16 %v207_v4, %v206_v3  ;;  %v209_v7 = vld [vmem:[%s1877_s3 + $0x18] sm:$0xff]  ;;  %v1639_v8 = vld [vmem:[#allocation2] sm:$0xff]  ;;  %v211_v11 = vld [vmem:[%s1877_s3 + $0x28] sm:$0xff]  ;;  %v1571_v21 = vmov 0.0   ;;  %vm792_vm7 = vcmask 130048   ;;  %vm898_vm8 = vcmask 64512  }
  0x16   : > { %v1430_v9 = vpack.c.bf16 %v209_v7, %v208_v5  ;;  %1310 = vmatprep.mubr.msk.f32.mxu0 %vm254_vm1, %v1639_v8  ;;  %v210_v10 = vld [vmem:[%s1877_s3 + $0x20] sm:$0xff]  ;;  %v215_v13 = vld [vmem:[%s1877_s3 + $0x48] sm:$0xff]  ;;  %v216_v18 = vld [vmem:[%s1877_s3 + $0x50] sm:$0xff]  ;;  %v1685_v30 = vshrl.u32 %v250_v25, 7  ;;  %v581_v35 = vrot.slane %v1639_v8, 1  ;;  %v586_v37 = vrot.slane %v1639_v8, 7 }
  0x17   : > { %1427 = vmatprep.subr.bf16.mxu0 %v1426_v6  ;;  %v214_v12 = vld [vmem:[%s1877_s3 + $0x40] sm:$0xff]  ;;  %v1434_v14 = vpack.c.bf16 %v211_v11, %v210_v10  ;;  %v1655_v15 = vld [vmem:[#allocation2 + $0x8] sm:$0xff]  ;;  %v217_v19 = vld [vmem:[%s1877_s3 + $0x58] sm:$0xff]  ;;  %s1572_s26 = smov 32   ;;  %s1573_s27 = smov 64   ;;  %vm989_vm9 = vcmask 523264  }
  0x18   : > { %1429 = vmatpush3.bf16.msra.mxu0 %v1426_v6  ;;  %v1443_v16 = vpack.c.bf16 %v215_v13, %v214_v12  ;;  %v1446_v20 = vpack.c.bf16 %v217_v19, %v216_v18  ;;  %v1669_v22 = vld [vmem:[#allocation3] sm:$0xff]  ;;  %v213_v24 = vld [vmem:[%s1877_s3 + $0x38] sm:$0xff]  ;;  %v222_v27 = vld [vmem:[%s1877_s3 + $0x80] sm:$0xff]  ;;  %v580_v34 = vadd.s32 8, %v1685_v30  ;;  %v582_v36 = vrot.slane %v1655_v15, 1  ;;  %p1234_p4 = scmp.ne.s32.totalorder %s1613_s19, 1 }
  0x19   : > { %1431 = vmatprep.subr.bf16.mxu0 %v1430_v9  ;;  %1435 = vmatprep.subr.bf16.mxu1 %v1434_v14  ;;  %v212_v23 = vld [vmem:[%s1877_s3 + $0x30] sm:$0xff]  ;;  %v223_v28 = vld [vmem:[%s1877_s3 + $0x88] sm:$0xff]  ;;  %v225_v32 = vld [vmem:[%s1877_s3 + $0x98] sm:$0xff]  ;;  %vm583_vm3 = vcmp.lt.s32.totalorder %v1685_v30, 7  ;;  %v587_v38 = vrot.slane %v1655_v15, 7  ;;  %vm588_vm4 = vcmp.lt.s32.totalorder %v1685_v30, 1 }
  0x1a   : > { %1437 = vmatpush3.bf16.msra.mxu1 %v1434_v14  ;;  %v1438_v26 = vpack.c.bf16 %v213_v24, %v212_v23  ;;  %v1454_v29 = vpack.c.bf16 %v223_v28, %v222_v27  ;;  %v224_v31 = vld [vmem:[%s1877_s3 + $0x90] sm:$0xff]  ;;  %v595_v39 = vand.u32 1, %v1685_v30  ;;  %v584_v40 = vsel %vm583_vm3, %v581_v35, %v582_v36  ;;  %v1710_v47 = vld [vmem:[%s1876_s2] sm:$0xff]  ;;  %v219_v55 = vld [vmem:[%s1877_s3 + $0x68] sm:$0xff] }
  0x1b   : > { %v1458_v33 = vpack.c.bf16 %v225_v32, %v224_v31  ;;  %v602_v41 = vand.u32 1, %v580_v34  ;;  %v590_v42 = vsel %vm588_vm4, %v587_v38, %v586_v37  ;;  %v585_v43 = vsel %vm583_vm3, %v582_v36, %v581_v35  ;;  %866 = vxpose.xlu0.b32.start.end [1/1] (short) (narrow) %v1710_v47, 16  ;;  %v1717_v49 = vld [vmem:[%s1878_s4] sm:$0xff]  ;;  %v220_v62 = vld [vmem:[%s1877_s3 + $0x70] sm:$0xff]  ;;  %v221_v63 = vld [vmem:[%s1877_s3 + $0x78] sm:$0xff] }
  0x1c   : > { %1433 = vmatpush3.bf16.msra.mxu0 %v1430_v9  ;;  %1439 = vmatprep.subr.bf16.mxu1 %v1438_v26  ;;  %vm615_vm5 = vcmp.eq.s32.totalorder %v595_v39, 0  ;;  %v589_v45 = vsel %vm588_vm4, %v586_v37, %v587_v38  ;;  %v252_v48 = vsub.s32 0, %v1685_v30  ;;  %v218_v54 = vld [vmem:[%s1877_s3 + $0x60] sm:$0xff]  ;;  %v425_v56 = vsub.s32 2, %v1685_v30  ;;  %v227_v6 = vld [vmem:[%s1877_s3 + $0xa8] sm:$0xff]  ;;  %v228_v11 = vld [vmem:[%s1877_s3 + $0xb0] sm:$0xff] }
  0x1d   : > { %1442 = vmatprep.subr.bf16.mxu0 %v1569_v17  ;;  %v617_v44 = vsel %vm615_vm5, %v584_v40, %v590_v42  ;;  %vm616_vm6 = vcmp.eq.s32.totalorder %v602_v41, 0  ;;  %v1449_v59 = vpack.c.bf16 %v219_v55, %v218_v54  ;;  %v1452_v1 = vpack.c.bf16 %v221_v63, %v220_v62  ;;  %v226_v5 = vld [vmem:[%s1877_s3 + $0xa0] sm:$0xff]  ;;  %v229_v12 = vld [vmem:[%s1877_s3 + $0xb8] sm:$0xff]  ;;  %v239_v42 = vld [vmem:[%s1877_s3 + $0x108] sm:$0xff] }
  0x1e   : > { %1441 = vmatpush3.bf16.msra.mxu1 %v1438_v26  ;;  %v618_v46 = vsel %vm616_vm6, %v585_v43, %v589_v45  ;;  %v253_v50 = vrot.slane %v1717_v49, %v252_v48  ;;  %v426_v61 = vrot.slane %v1717_v49, %v425_v56  ;;  %v1462_v7 = vpack.c.bf16 %v227_v6, %v226_v5  ;;  %v238_v41 = vld [vmem:[%s1877_s3 + $0x100] sm:$0xff]  ;;  %v240_v43 = vld [vmem:[%s1877_s3 + $0x110] sm:$0xff]  ;;  %v245_v54 = vld [vmem:[%s1877_s3 + $0x138] sm:$0xff] }
  0x1f   : > { %1311 = vmatmul.mubr.msk.f32.vlgmr.msra.gmra.mrb[0].mxu0 %vm254_vm1, %v1655_v15  ;;  %1448 = vmatprep.subr.bf16.mxu1 %v1569_v17  ;;  %v621_v9 = vsub.s32 4, %v1685_v30  ;;  %v1466_v14 = vpack.c.bf16 %v229_v12, %v228_v11  ;;  %v340_v24 = vsub.s32 1, %v1685_v30  ;;  %v230_v48 = vld [vmem:[%s1877_s3 + $0xc0] sm:$0xff]  ;;  %v248_v62 = vld [vmem:[%s1877_s3 + $0x150] sm:$0xff]  ;;  %v249_v63 = vld [vmem:[%s1877_s3 + $0x158] sm:$0xff]  ;;  %vm1087_vm10 = vcmask 785408  }
  0x20   : > { %1444 = vmatpush3.bf16.msra.mxu0 %v1443_v16  ;;  %1332 = vmatprep.mubr.msk.f32.mxu0 %vm1570_vm2, %v1571_v21  ;;  %v246_v56 = vld [vmem:[%s1877_s3 + $0x140] sm:$0xff]  ;;  %v236_v6 = vld [vmem:[%s1877_s3 + $0xf0] sm:$0xff] }
  0x21   : > { %1445 = vmatprep.subr.bf16.mxu0 %v1569_v17  ;;  %v622_v10 = vrot.slane %v1717_v49, %v621_v9  ;;  %v341_v25 = vrot.slane %v1717_v49, %v340_v24 }
  0x24   : > { %1447 = vmatpush3.bf16.msra.mxu0 %v1446_v20 }
  0x25   : > { %1455 = vmatprep.subr.bf16.mxu0 %v1454_v29 }
  0x27   : > { %1333 = vmatmul.mubr.msk.f32.vlgmr.msra.gmra.mrb[2].mxu0 %vm254_vm1, %v1669_v22 }
  0x28   : > { %1457 = vmatpush3.bf16.msra.mxu0 %v1454_v29  ;;  %1354 = vmatprep.mubr.msk.f32.mxu0 %vm254_vm1, %v617_v44  ;;  %v503_v29 = vsub.s32 3, %v1685_v30  ;;  %v1485_v44 = vpack.c.bf16 %v239_v42, %v238_v41 }
  0x29   : > { %1459 = vmatprep.subr.bf16.mxu0 %v1458_v33 }
  0x2a   : > { %v504_v34 = vrot.slane %v1717_v49, %v503_v29  ;;  %v1085_v29 = vsub.s32 7, %v1685_v30 }
  0x2c   : > { %1461 = vmatpush3.bf16.msra.mxu0 %v1458_v33 }
  0x2d   : > { %1470 = vmatprep.subr.bf16.mxu0 %v1569_v17 }
  0x2f   : > { %1355 = vmatmul.mubr.msk.f32.vlgmr.msra.gmra.mrb[4].mxu0 %vm254_vm1, %v618_v46  ;;  %v242_v46 = vld [vmem:[%s1877_s3 + $0x120] sm:$0xff] }
  0x30   : > { %1372 = vmatprep.mubr.msk.f32.mxu0 %vm1570_vm2, %v1571_v21 }
  0x9b   : > { %v882_v33 = vpop.trf.xlu0 }
  0x9f   : > { %v883_v38 = vpop.trf.xlu0 }
  0xf2   : > { %v1312_v51 = vpop.f32.mrb[0].mxu0 }
  0xf3   : > { %v333_v52 = vadd.f32 %v1312_v51, %v253_v50  ;;  %v327_v53 = vpop.f32.mrb[1].mxu0 }
  0xf4   : > { %v328_v57 = vadd.f32 %v327_v53, %v253_v50  ;;  %v231_v50 = vld [vmem:[%s1877_s3 + $0xc8] sm:$0xff]  ;;  %v244_v53 = vld [vmem:[%s1877_s3 + $0x130] sm:$0xff] }
  0xf5   : > { %v337_v60 = vmax.f32 %v333_v52, 0.0  ;;  %v1474_v51 = vpack.c.bf16 %v231_v50, %v230_v48  ;;  %v1497_v55 = vpack.c.bf16 %v245_v54, %v244_v53 }
  0xf6   : > { %v336_v58 = vmax.f32 %v328_v57, 0.0  ;;  %v247_v57 = vld [vmem:[%s1877_s3 + $0x148] sm:$0xff] }
  0xf8   : > { %1321 = vmatprep.mubr.msk.f32.mxu1 %vm254_vm1, %v336_v58  ;;  %v1501_v58 = vpack.c.bf16 %v247_v57, %v246_v56 }
  0xf9   : > { %1322 = vmatmul.mubr.msk.f32.vlgmr.msra.gmra.mrb[0].mxu1 %vm254_vm1, %v337_v60  ;;  %v233_v60 = vld [vmem:[%s1877_s3 + $0xd8] sm:$0xff] }
  0xfa   : > { %1450 = vmatpush3.bf16.msra.mxu1 %v1449_v59  ;;  %v496_v0 = vpop.f32.mrb[2].mxu0  ;;  %1343 = vmatprep.mubr.msk.f32.mxu1 %vm1570_vm2, %v1571_v21  ;;  %v232_v59 = vld [vmem:[%s1877_s3 + $0xd0] sm:$0xff] }
  0xfb   : > { %v497_v2 = vadd.f32 %v496_v0, %v426_v61  ;;  %v1334_v3 = vpop.f32.mrb[3].mxu0  ;;  %1451 = vmatprep.subr.bf16.mxu1 %v1569_v17  ;;  %v1477_v61 = vpack.c.bf16 %v233_v60, %v232_v59  ;;  %v1505_v0 = vpack.c.bf16 %v249_v63, %v248_v62 }
  0xfd   : > { %v500_v4 = vmax.f32 %v497_v2, 0.0  ;;  %v235_v2 = vld [vmem:[%s1877_s3 + $0xe8] sm:$0xff] }
  0xfe   : > { %1453 = vmatpush3.bf16.msra.mxu1 %v1452_v1  ;;  %v234_v1 = vld [vmem:[%s1877_s3 + $0xe0] sm:$0xff] }
  0xff   : > { %1463 = vmatprep.subr.bf16.mxu1 %v1462_v7  ;;  %v1480_v3 = vpack.c.bf16 %v235_v2, %v234_v1 }
 0x101   : > { %1344 = vmatmul.mubr.msk.f32.vlgmr.msra.gmra.mrb[2].mxu1 %vm254_vm1, %v500_v4  ;;  %v708_v4 = vsub.s32 5, %v1685_v30 }
 0x102   : > { %1465 = vmatpush3.bf16.msra.mxu1 %v1462_v7  ;;  %v1356_v13 = vpop.f32.mrb[4].mxu0  ;;  %v237_v7 = vld [vmem:[%s1877_s3 + $0xf8] sm:$0xff] }
 0x103   : > { %v701_v16 = vadd.f32 %v1356_v13, %v622_v10  ;;  %v695_v18 = vpop.f32.mrb[5].mxu0  ;;  %1467 = vmatprep.subr.bf16.mxu1 %v1466_v14  ;;  %v709_v11 = vrot.slane %v1717_v49, %v708_v4 }
 0x104   : > { %v696_v19 = vadd.f32 %v695_v18, %v622_v10  ;;  %v1483_v10 = vpack.c.bf16 %v237_v7, %v236_v6 }
 0x105   : > { %v705_v20 = vmax.f32 %v701_v16, 0.0 }
 0x106   : > { %1469 = vmatpush3.bf16.msra.mxu1 %v1466_v14  ;;  %v704_v23 = vmax.f32 %v696_v19, 0.0 }
 0x107   : > { %1486 = vmatprep.subr.bf16.mxu1 %v1485_v44 }
 0x108   : > { %1365 = vmatprep.mubr.msk.f32.mxu1 %vm254_vm1, %v704_v23 }
 0x109   : > { %1366 = vmatmul.mubr.msk.f32.vlgmr.msra.gmra.mrb[4].mxu1 %vm254_vm1, %v705_v20 }
 0x10a   : > { %1488 = vmatpush3.bf16.msra.mxu1 %v1485_v44 }
 0x1cc   : > { %v1323_v26 = vpop.f32.mrb[0].mxu1 }
 0x1cd   : > { %v420_v27 = vadd.f32 %v1323_v26, %v341_v25  ;;  %v414_v28 = vpop.f32.mrb[1].mxu1 }
 0x1ce   : > { %v415_v31 = vadd.f32 %v414_v28, %v341_v25 }
 0x1d0   : > { %v1471_v32 = vpack.c.bf16 %v420_v27, %v415_v31  ;;  %v1086_v31 = vrot.slane %v1717_v49, %v1085_v29 }
 0x1d2   : > { %1472 = vmatpush3.bf16.msra.mxu0 %v1471_v32 }
 0x1d4   : > { %v574_v35 = vpop.f32.mrb[2].mxu1 }
 0x1d5   : > { %v575_v36 = vadd.f32 %v574_v35, %v504_v34  ;;  %v1345_v37 = vpop.f32.mrb[3].mxu1  ;;  %1373 = vmatmul.mubr.msk.f32.vlgmr.msra.gmra.mrb[6].mxu0 %vm792_vm7, %v1710_v47  ;;  %v243_v47 = vld [vmem:[%s1877_s3 + $0x128] sm:$0xff] }
 0x1d6   : > { %1377 = vmatprep.mubr.msk.f32.mxu0 %vm898_vm8, %v882_v33  ;;  %v1493_v52 = vpack.c.bf16 %v243_v47, %v242_v46 }
 0x1d7   : > { %1375 = vmatprep.subr.mxu0 %v575_v36 }
 0x1d8   : > { %1376 = vmatpush3.msra.mxu0 %v575_v36 }
 0x1d9   : > { %1378 = vmatmul.mubr.msk.f32.vlgmr.msra.gmra.mrb[8].mxu0 %vm898_vm8, %v883_v38  ;;  %1473 = vmatprep.subr.bf16.mxu0 %v1569_v17 }
 0x1da   : > { %1396 = vmatprep.mubr.msk.f32.mxu0 %vm1570_vm2, %v1571_v21  ;;  %v241_v21 = vld [vmem:[%s1877_s3 + $0x118] sm:$0xff]  ;;  %1475 = vmatpush3.bf16.msra.mxu0 %v1474_v51 }
 0x1db   : > { %v1489_v45 = vpack.c.bf16 %v241_v21, %v240_v43  ;;  %1476 = vmatprep.subr.bf16.mxu0 %v1569_v17 }
 0x1dc   : > { %v1764_v39 = vpop.f32.mrb[4].mxu1 }
 0x1dd   : > { %v782_v40 = vpop.f32.mrb[5].mxu1  ;;  %1490 = vmatprep.subr.bf16.mxu1 %v1489_v45 }
 0x1de   : > { %1492 = vmatpush3.bf16.msra.mxu1 %v1489_v45  ;;  %1478 = vmatpush3.bf16.msra.mxu0 %v1477_v61  ;;  %v783_v14 = vadd.f32 %v782_v40, %v709_v11 }
 0x1df   : > { %1494 = vmatprep.subr.bf16.mxu1 %v1493_v52  ;;  %1479 = vmatprep.subr.bf16.mxu0 %v1569_v17 }
 0x1e2   : > { %1496 = vmatpush3.bf16.msra.mxu1 %v1493_v52  ;;  %1481 = vmatpush3.bf16.msra.mxu0 %v1480_v3 }
 0x1e3   : > { %1498 = vmatprep.subr.bf16.mxu1 %v1497_v55  ;;  %1482 = vmatprep.subr.bf16.mxu0 %v1569_v17  ;;  %v788_v17 = vadd.f32 %v1764_v39, %v709_v11 }
 0x1e6   : > { %1500 = vmatpush3.bf16.msra.mxu1 %v1497_v55  ;;  %1484 = vmatpush3.bf16.msra.mxu0 %v1483_v10 }
 0x1e7   : > { %1502 = vmatprep.subr.bf16.mxu1 %v1501_v58 }
 0x1ea   : > { %1504 = vmatpush3.bf16.msra.mxu1 %v1501_v58 }
 0x1eb   : > { %1506 = vmatprep.subr.bf16.mxu1 %v1505_v0 }
 0x1ee   : > { %1508 = vmatpush3.bf16.msra.mxu1 %v1505_v0 }
 0x2a8   : > { %v862_v5 = vpop.f32.mrb[6].mxu0 }
 0x2a9   : > { %v1374_v9 = vpop.f32.mrb[7].mxu0 }
 0x2ac   : > { %v1379_v12 = vpop.f32.mrb[8].mxu0 }
 0x2ad   : > { %1067 = vrot.lane.b32.xlu1 %v1379_v12, %s1572_s26  ;;  %v971_v13 = vpop.f32.mrb[9].mxu0 }
 0x2ae   : > { %1065 = vrot.lane.b32.xlu0 %v971_v13, %s1572_s26 }
 0x2b1   : > { %1073 = vrot.lane.b32.xlu1 %v783_v14, %s1573_s27 }
 0x2b5   : > { %1075 = vrot.lane.b32.xlu1 %v788_v17, %s1573_s27 }
 0x2b9   : > { %981 = vrot.lane.b32.xlu1 %v862_v5, %s1572_s26 }
 0x31f   : > { %v1068_v16 = vpop.permute.xlu1 %1067 }
 0x320   : > { %v1066_v18 = vpop.permute.xlu0 %1065  ;;  %v1080_v24 = vsel %vm254_vm1, %v1655_v15, %v1068_v16 }
 0x321   : > { %v1079_v19 = vsel %vm254_vm1, %v1639_v8, %v1066_v18  ;;  %v987_v8 = vsub.s32 6, %v1685_v30 }
 0x323   : > { %v1074_v20 = vpop.permute.xlu1 %1073  ;;  %v988_v35 = vrot.slane %v1717_v49, %v987_v8 }
 0x324   : > { %v1081_v23 = vsel %vm989_vm9, %v1079_v19, %v1074_v20 }
 0x325   : > { %1423 = vmatprep.mubr.msk.f32.mxu1 %vm1087_vm10, %v1081_v23 }
 0x327   : > { %v1076_v25 = vpop.permute.xlu1 %1075 }
 0x328   : > { %v1082_v26 = vsel %vm989_vm9, %v1080_v24, %v1076_v25 }
 0x329   : > { %1424 = vmatmul.mubr.msk.f32.vlgmr.msra.gmra.mrb[6].mxu1 %vm1087_vm10, %v1082_v26 }
 0x32b   : > { %v982_v27 = vpop.permute.xlu1 %981 }
 0x32c   : > { %v984_v28 = vsel %vm254_vm1, %v1669_v22, %v982_v27 }
 0x32d   : > { %1397 = vmatmul.mubr.msk.f32.vlgmr.msra.gmra.mrb[10].mxu0 %vm989_vm9, %v984_v28 }
 0x3fc   : > { %v1425_v32 = vpop.f32.mrb[6].mxu1 }
 0x3fd   : > { %v1166_v33 = vadd.f32 %v1425_v32, %v1086_v31  ;;  %v1160_v34 = vpop.f32.mrb[7].mxu1  ;;  %1175 = sbr.rel (%p1234_p4) target bundleno = 1028 (0x404), region = 48 }
 0x3fe   : > { %v1161_v15 = vadd.f32 %v1160_v34, %v1086_v31 }
 0x3ff   : > { %1170 = vst.msk [vmem:[#allocation2 + $0x8] sm:$0xff] %vm254_vm1, %v1166_v33  ;;  %1177 = vst.msk [vmem:[#allocation4 + $0x8] sm:$0xff] (!%p1234_p4), %vm254_vm1, %v1166_v33 }
 0x400   : > { %1169 = vst.msk [vmem:[#allocation2] sm:$0xff] %vm254_vm1, %v1161_v15  ;;  %v1059_v36 = vpop.f32.mrb[10].mxu0  ;;  %1176 = vst.msk [vmem:[#allocation4] sm:$0xff] (!%p1234_p4), %vm254_vm1, %v1161_v15 }
 0x401   : > { %v1060_v37 = vadd.f32 %v1059_v36, %v988_v35  ;;  %v1398_v22 = vpop.f32.mrb[11].mxu0 }
 0x403   : > { %1171 = vst.msk [vmem:[#allocation3] sm:$0xff] %vm254_vm1, %v1060_v37 }
 0x404 PF: > { %p1513_p5 = scmp.eq.s32.totalorder %s1613_s19, 1  ;;  %s1574_s28 = smov [#allocation4]  }
 0x405   : > { %s1184_s29 = sshll.u32 %s1574_s28, 4  ;;  %s1185_s29 = int_to_ptr.vmem [resolvable:$true] %s1184_s29 }
 0x406   : > { %s1531_s30 = scalar_lea.vmem %s1185_s29, 256  ;;  %p1538_p9 = scmp.lt.s32.totalorder %s1185_s29, %s1185_s29 }
 0x407   : > { %p1532_p6 = scmp.ne.s32.totalorder %s1185_s29, %s1531_s30  ;;  %p1539_p10 = scmp.lt.s32.totalorder %s1531_s30, %s1531_s30 }
 0x409   : > { %p1533_p7 = pnand %p1532_p6, %p1513_p5  ;;  %p1540_p11 = por %p1539_p10, %p1538_p9 }
 0x40b   : > { %p1534_p8 = pneg %p1533_p7 }
 0x40d   : > { %p1541_p12 = pnand %p1540_p11, %p1534_p8 }
 0x40f   : > { %1544 = shalt.err (!%p1541_p12)
}
 0x410   : > { %s1545_s8 = scalar_lea.hbm %s1879_s5, 256 }
 0x411   : > { %p1546_p13 = scmp.ne.s32.totalorder %s1879_s5, %s1545_s8  ;;  %p1551_p2 = scmp.lt.u32.totalorder %s1545_s8, %s1879_s5 }
 0x413   : > { %p1547_p0 = pnand %p1546_p13, %p1513_p5 }
 0x415   : > { %p1548_p1 = pneg %p1547_p0 }
 0x417   : > { %p1553_p3 = pnand %p1551_p2, %p1548_p1 }
 0x419   : > { %1556 = shalt.err (!%p1553_p3)
}
 0x41a   : > { %s1575_s13 = smov 128   ;;  %s1576_s14 = smov 8  }
 0x41b   : > { %1510 = dma.vmem_to_hbm [thread:$0]  (%p1513_p5), %s1185_s29, 256, %s1879_s5, [#allocation5], %s1575_s13, %s1575_s13, %s1576_s14  }
 0x41c   : > { %1562 = dma.done.wait (%p1513_p5), [#allocation5], 256  }
 0x41d   : > { %1564 = vsyncadd (%p1513_p5), [#allocation5], 4294967040 }
 0x41e PF: > { %s16_s18 = sadd.s32 1, %s1567_s18  }
 0x41f   : > { %p13_p4 = scmp.ge.s32.totalorder %s16_s18, 4  }
 0x421   :  { %15 = sbr.rel (!%p13_p4) target bundleno = 1 (0x1), region = 72 }
 0x428   :  { %1200 = vsyncpa [#allocation5], 1 }
 0x429   :  { %1202 = vsyncpa [#allocation5 + $0x1], 1 }

</bundles_post_ra>
